<compile_context>
chip_gen: v7x
topology: tpu7x:2x2x1
jax: 0.10.0
libtpu: 0.0.40
codegen_flags: <defaults>
</compile_context>

<pallas_src>
import functools

import jax
import jax.numpy as jnp
from jax.experimental import pallas as pl
from jax.experimental.pallas import tpu as pltpu


# ---------------------------------------------------------------------------
# Fused kernel: one batch element per grid step, all heads inside the step.
# ---------------------------------------------------------------------------
def _fused_mha_kernel(x_ref, wqkv_ref, wproj_ref, bias_ref, o_ref, ctx_ref, *,
                      num_heads, mxu_dtype, approx_recip):
    N, C = x_ref.shape
    Dh = C // num_heads

    x = x_ref[...].astype(mxu_dtype)   # (N, C)
    w_qkv = wqkv_ref[...]              # (C, 3C) already mxu_dtype, scale folded
    w_proj = wproj_ref[...]            # (C, C)  already mxu_dtype
    bias = bias_ref[...]               # (1, C)  f32, broadcasts over N

    # Fused QKV projection: one big MXU matmul with f32 accumulation.
    # Column layout matches torch's reshape(B, N, 3, H, Dh):
    #   [:, 0:C] -> q (already scaled), [:, C:2C] -> k, [:, 2C:] -> v
    qkv = jnp.dot(x, w_qkv, preferred_element_type=jnp.float32)   # (N, 3C) f32

    q = qkv[:, :C].astype(mxu_dtype)
    k = qkv[:, C:2 * C].astype(mxu_dtype)
    v = qkv[:, 2 * C:].astype(mxu_dtype)

    # Static loop over heads; each iteration ends in a store to ctx_ref, so its
    # (N, N) temporaries do not stay live across iterations.
    for h in range(num_heads):
        sl = slice(h * Dh, (h + 1) * Dh)
        q_h = q[:, sl]                           # (N, Dh)
        k_h = k[:, sl]                           # (N, Dh)
        v_h = v[:, sl]                           # (N, Dh)

        # scores = q_h @ k_h^T without materializing a transpose.
        s = jax.lax.dot_general(
            q_h, k_h, (((1,), (1,)), ((), ())),
            preferred_element_type=jnp.float32)  # (N, N) f32

        # Numerically-stable softmax statistics in f32.
        m = jnp.max(s, axis=-1, keepdims=True)
        p = jnp.exp(s - m)
        l = jnp.sum(p, axis=-1, keepdims=True)

        # Un-normalized PV matmul, then normalize the (N, Dh) result
        # (O(N*Dh) VPU work instead of O(N*N)).
        pv = jnp.dot(p.astype(mxu_dtype), v_h,
                     preferred_element_type=jnp.float32)           # (N, Dh) f32
        inv_l = pl.reciprocal(l, approx=approx_recip)              # EUP slot
        ctx_ref[:, sl] = (pv * inv_l).astype(ctx_ref.dtype)

    # Single full-depth output projection (K = C) + bias; one lane-dense store.
    y = jnp.dot(ctx_ref[...], w_proj, preferred_element_type=jnp.float32)
    o_ref[...] = (y + bias).astype(o_ref.dtype)


def _vmem_limit_bytes(N, C, x_itemsize, mxu_itemsize):
    # Pipeline operands are double-buffered by default.
    io_bytes = 2 * 2 * (N * C * max(x_itemsize, 4))        # x in + out blocks
    w_bytes = 2 * (C * 3 * C + C * C) * mxu_itemsize       # resident weights
    bias_bytes = 2 * C * 4
    scratch = N * C * mxu_itemsize                          # ctx scratch
    # In-kernel temporaries: qkv f32, q/k/v casts, scores + exp, projection.
    temps = (N * 3 * C * 4) + (3 * N * C * mxu_itemsize) + (2 * N * N * 4) \
            + (2 * N * C * 4)
    need = io_bytes + w_bytes + bias_bytes + scratch + temps
    # 2x headroom for compiler-internal scratch, floor 4 MiB, cap < 64 MiB
    # (v7x physical VMEM per TensorCore).
    return int(min(max(2 * need, 4 << 20), 60 << 20))


# ---------------------------------------------------------------------------
# Wrapper
# ---------------------------------------------------------------------------
def multi_head_attention(x, w_qkv, w_proj, b_proj, num_heads,
                         mxu_dtype=jnp.bfloat16, approx_recip=True):
    """Forward pass matching the PyTorch MultiHeadAttention module (eval mode).

    x:      (B, N, C)
    w_qkv:  (C, 3C)   == PyTorch qkv.weight.T   (qkv_bias=False)
    w_proj: (C, C)    == PyTorch proj.weight.T
    b_proj: (C,)      == PyTorch proj.bias
    mxu_dtype: dtype of MXU matmul operands.  bf16 (default) is ~2x MXU
               throughput and half the operand bytes on v5e, v6e and v7x;
               accumulation and all softmax math stay f32.
    approx_recip: use the EUP approximate reciprocal for the softmax
               denominator (set False for bit-tighter validation).
    """
    B, N, C = x.shape
    assert C % num_heads == 0
    Dh = C // num_heads
    scale = Dh ** (-0.5)

    # Fold the softmax scale into the q columns of w_qkv and pre-cast both
    # weights to mxu_dtype ONCE here (not per grid step inside the kernel).
    w_qkv_prep = jnp.concatenate(
        [w_qkv[:, :C] * scale, w_qkv[:, C:]], axis=1).astype(mxu_dtype)
    w_proj_prep = w_proj.astype(mxu_dtype)
    bias2d = b_proj.reshape(1, C).astype(jnp.float32)

    kernel = functools.partial(
        _fused_mha_kernel, num_heads=num_heads, mxu_dtype=mxu_dtype,
        approx_recip=approx_recip)

    mxu_itemsize = jnp.dtype(mxu_dtype).itemsize
    vmem_limit = _vmem_limit_bytes(N, C, jnp.dtype(x.dtype).itemsize,
                                   mxu_itemsize)

    # Block shapes equal the full array dims (legal regardless of (8,128)).
    # Weight/bias specs return constant block indices -> fetched once and kept
    # resident in VMEM across the batch grid.
    return pl.pallas_call(
        kernel,
        out_shape=jax.ShapeDtypeStruct((B, N, C), x.dtype),
        grid=(B,),
        in_specs=[
            pl.BlockSpec((pl.Squeezed(), N, C), lambda b: (b, 0, 0)),  # x[b]
            pl.BlockSpec((C, 3 * C), lambda b: (0, 0)),                # w_qkv
            pl.BlockSpec((C, C), lambda b: (0, 0)),                    # w_proj
            pl.BlockSpec((1, C), lambda b: (0, 0)),                    # bias
        ],
        out_specs=pl.BlockSpec((pl.Squeezed(), N, C), lambda b: (b, 0, 0)),
        scratch_shapes=[pltpu.VMEM((N, C), mxu_dtype)],                # ctx
        compiler_params=pltpu.CompilerParams(
            dimension_semantics=("parallel",),   # megacore over batch on v7x
            vmem_limit_bytes=vmem_limit),
    )(x, w_qkv_prep, w_proj_prep, bias2d)


# ---------------------------------------------------------------------------
# Main
# ---------------------------------------------------------------------------
if __name__ == "__main__":
    B, N, C = 2, 8, 32
    num_heads = 8

    key = jax.random.PRNGKey(0)
    k_x, k_qkv, k_proj, k_bias = jax.random.split(key, 4)

    x = jax.random.normal(k_x, (B, N, C), dtype=jnp.float32)
    # PyTorch weight layout is (out, in); we store the transposed (in, out)
    # form used by x @ W^T.
    w_qkv = 0.02 * jax.random.normal(k_qkv, (C, 3 * C), dtype=jnp.float32)
    w_proj = 0.02 * jax.random.normal(k_proj, (C, C), dtype=jnp.float32)
    b_proj = 0.02 * jax.random.normal(k_bias, (C,), dtype=jnp.float32)

    # Pure-JAX reference (same math as the PyTorch forward, eval mode).
    Dh = C // num_heads
    scale = Dh ** (-0.5)
    qkv_ref = (x.reshape(B * N, C) @ w_qkv).reshape(B, N, 3, num_heads, Dh)
    qkv_ref = jnp.transpose(qkv_ref, (2, 0, 3, 1, 4))
    q_r, k_r, v_r = qkv_ref[0], qkv_ref[1], qkv_ref[2]
    attn_r = jax.nn.softmax(
        jnp.einsum("bhnd,bhmd->bhnm", q_r, k_r) * scale, axis=-1)
    out_r = jnp.einsum("bhnm,bhmd->bhnd", attn_r, v_r)
    out_r = jnp.transpose(out_r, (0, 2, 1, 3)).reshape(B * N, C)
    y_ref = (out_r @ w_proj + b_proj).reshape(B, N, C)

    # f32 MXU path with exact reciprocal: validation-grade match.
    y32 = jax.block_until_ready(
        multi_head_attention(x, w_qkv, w_proj, b_proj, num_heads,
                             mxu_dtype=jnp.float32, approx_recip=False))
    assert y32.shape == (B, N, C)
    assert jnp.allclose(y32, y_ref, atol=1e-3, rtol=1e-3), "f32 path mismatch"

    # Default bf16 MXU-operand path (v5e/v6e/v7x throughput; f32 accumulation).
    ybf = jax.block_until_ready(
        multi_head_attention(x, w_qkv, w_proj, b_proj, num_heads))
    assert ybf.shape == (B, N, C)
    assert jnp.allclose(ybf, y_ref, atol=5e-3, rtol=5e-3), "bf16 path mismatch"

    print("KERNEL_OK")
</pallas_src>

<mosaic_0001>
module attributes {stable_mosaic.version = 11 : i64} {
  func.func @_fused_mha_kernel(%arg0: i32, %arg1: memref<1x8x32xf32, #tpu.memory_space<vmem>>, %arg2: memref<32x96xf32, #tpu.memory_space<vmem>>, %arg3: memref<32x32xf32, #tpu.memory_space<vmem>>, %arg4: memref<1x32xf32, #tpu.memory_space<vmem>>, %arg5: memref<1x8x32xf32, #tpu.memory_space<vmem>>, %arg6: memref<8x32xf32, #tpu.memory_space<vmem>>) attributes {dimension_semantics = [#tpu.dimension_semantics<parallel>], iteration_bounds = array<i64: 2>, scalar_prefetch = 0 : i64, scratch_operands = 1 : i64, tpu.core_type = #tpu.core_type<tc>, window_params = [{transform_indices = @transform_0, window_bounds = array<i64: 1, 8, 32>}, {pipeline_mode = #tpu.pipeline_mode<synchronous>, transform_indices = @transform_1, window_bounds = array<i64: 32, 96>}, {pipeline_mode = #tpu.pipeline_mode<synchronous>, transform_indices = @transform_2, window_bounds = array<i64: 32, 32>}, {pipeline_mode = #tpu.pipeline_mode<synchronous>, transform_indices = @transform_3, window_bounds = array<i64: 1, 32>}, {transform_indices = @transform_4, window_bounds = array<i64: 1, 8, 32>}]} {
    %c0 = arith.constant 0 : index
    %c0_0 = arith.constant 0 : index
    %c0_1 = arith.constant 0 : index
    %0 = vector.load %arg1[%c0, %c0_0, %c0_1] : memref<1x8x32xf32, #tpu.memory_space<vmem>>, vector<1x8x32xf32>
    %1 = vector.shape_cast %0 : vector<1x8x32xf32> to vector<8x32xf32>
    %c0_2 = arith.constant 0 : index
    %c0_3 = arith.constant 0 : index
    %2 = vector.load %arg2[%c0_2, %c0_3] : memref<32x96xf32, #tpu.memory_space<vmem>>, vector<32x96xf32>
    %c0_4 = arith.constant 0 : index
    %c0_5 = arith.constant 0 : index
    %3 = vector.load %arg3[%c0_4, %c0_5] : memref<32x32xf32, #tpu.memory_space<vmem>>, vector<32x32xf32>
    %c0_6 = arith.constant 0 : index
    %c0_7 = arith.constant 0 : index
    %4 = vector.load %arg4[%c0_6, %c0_7] : memref<1x32xf32, #tpu.memory_space<vmem>>, vector<1x32xf32>
    %cst = arith.constant dense<0.000000e+00> : vector<8x96xf32>
    %5 = tpu.matmul %1, %2, %cst {dimension_numbers = #tpu.dot_dimension_numbers<[1], [0], [0], [1], [0, 0, 1, 1], [], []>} : vector<8x32xf32>, vector<32x96xf32>, vector<8x96xf32> -> vector<8x96xf32>
    %6 = vector.extract_strided_slice %5 {offsets = [0, 0], sizes = [8, 32], strides = [1, 1]} : vector<8x96xf32> to vector<8x32xf32>
    %7 = vector.extract_strided_slice %5 {offsets = [0, 32], sizes = [8, 32], strides = [1, 1]} : vector<8x96xf32> to vector<8x32xf32>
    %8 = vector.extract_strided_slice %5 {offsets = [0, 64], sizes = [8, 32], strides = [1, 1]} : vector<8x96xf32> to vector<8x32xf32>
    %9 = vector.extract_strided_slice %6 {offsets = [0, 0], sizes = [8, 4], strides = [1, 1]} : vector<8x32xf32> to vector<8x4xf32>
    %10 = vector.extract_strided_slice %7 {offsets = [0, 0], sizes = [8, 4], strides = [1, 1]} : vector<8x32xf32> to vector<8x4xf32>
    %11 = vector.extract_strided_slice %8 {offsets = [0, 0], sizes = [8, 4], strides = [1, 1]} : vector<8x32xf32> to vector<8x4xf32>
    %cst_8 = arith.constant dense<0.000000e+00> : vector<8x8xf32>
    %12 = tpu.matmul %9, %10, %cst_8 {dimension_numbers = #tpu.dot_dimension_numbers<[1], [1], [0], [0], [0, 0, 1, 0], [], []>} : vector<8x4xf32>, vector<8x4xf32>, vector<8x8xf32> -> vector<8x8xf32>
    %cst_9 = arith.constant dense<0xFF800000> : vector<8xf32>
    %13 = vector.multi_reduction <maximumf>, %12, %cst_9 [1] : vector<8x8xf32> to vector<8xf32>
    %14 = vector.shape_cast %13 : vector<8xf32> to vector<8x1xf32>
    %15 = vector.broadcast %14 : vector<8x1xf32> to vector<8x8xf32>
    %16 = arith.subf %12, %15 : vector<8x8xf32>
    %17 = math.exp %16 : vector<8x8xf32>
    %cst_10 = arith.constant dense<0.000000e+00> : vector<8xf32>
    %18 = vector.multi_reduction <add>, %17, %cst_10 [1] : vector<8x8xf32> to vector<8xf32>
    %19 = vector.shape_cast %18 : vector<8xf32> to vector<8x1xf32>
    %cst_11 = arith.constant dense<0.000000e+00> : vector<8x4xf32>
    %20 = tpu.matmul %17, %11, %cst_11 {dimension_numbers = #tpu.dot_dimension_numbers<[1], [0], [0], [1], [0, 0, 1, 1], [], []>} : vector<8x8xf32>, vector<8x4xf32>, vector<8x4xf32> -> vector<8x4xf32>
    %21 = tpu.reciprocal %19 : vector<8x1xf32> -> vector<8x1xf32>
    %22 = vector.broadcast %21 : vector<8x1xf32> to vector<8x4xf32>
    %23 = arith.mulf %20, %22 : vector<8x4xf32>
    %c0_12 = arith.constant 0 : index
    %c0_13 = arith.constant 0 : index
    %24 = vector.load %arg6[%c0_12, %c0_13] : memref<8x32xf32, #tpu.memory_space<vmem>>, vector<8x4xf32>
    tpu.vector_store %arg6[%c0_12, %c0_13], %23 {strides = array<i32>} : memref<8x32xf32, #tpu.memory_space<vmem>>, vector<8x4xf32>,
    %25 = vector.extract_strided_slice %6 {offsets = [0, 4], sizes = [8, 4], strides = [1, 1]} : vector<8x32xf32> to vector<8x4xf32>
    %26 = vector.extract_strided_slice %7 {offsets = [0, 4], sizes = [8, 4], strides = [1, 1]} : vector<8x32xf32> to vector<8x4xf32>
    %27 = vector.extract_strided_slice %8 {offsets = [0, 4], sizes = [8, 4], strides = [1, 1]} : vector<8x32xf32> to vector<8x4xf32>
    %cst_14 = arith.constant dense<0.000000e+00> : vector<8x8xf32>
    %28 = tpu.matmul %25, %26, %cst_14 {dimension_numbers = #tpu.dot_dimension_numbers<[1], [1], [0], [0], [0, 0, 1, 0], [], []>} : vector<8x4xf32>, vector<8x4xf32>, vector<8x8xf32> -> vector<8x8xf32>
    %cst_15 = arith.constant dense<0xFF800000> : vector<8xf32>
    %29 = vector.multi_reduction <maximumf>, %28, %cst_15 [1] : vector<8x8xf32> to vector<8xf32>
    %30 = vector.shape_cast %29 : vector<8xf32> to vector<8x1xf32>
    %31 = vector.broadcast %30 : vector<8x1xf32> to vector<8x8xf32>
    %32 = arith.subf %28, %31 : vector<8x8xf32>
    %33 = math.exp %32 : vector<8x8xf32>
    %cst_16 = arith.constant dense<0.000000e+00> : vector<8xf32>
    %34 = vector.multi_reduction <add>, %33, %cst_16 [1] : vector<8x8xf32> to vector<8xf32>
    %35 = vector.shape_cast %34 : vector<8xf32> to vector<8x1xf32>
    %cst_17 = arith.constant dense<0.000000e+00> : vector<8x4xf32>
    %36 = tpu.matmul %33, %27, %cst_17 {dimension_numbers = #tpu.dot_dimension_numbers<[1], [0], [0], [1], [0, 0, 1, 1], [], []>} : vector<8x8xf32>, vector<8x4xf32>, vector<8x4xf32> -> vector<8x4xf32>
    %37 = tpu.reciprocal %35 : vector<8x1xf32> -> vector<8x1xf32>
    %38 = vector.broadcast %37 : vector<8x1xf32> to vector<8x4xf32>
    %39 = arith.mulf %36, %38 : vector<8x4xf32>
    %c0_18 = arith.constant 0 : index
    %c4 = arith.constant 4 : index
    %40 = vector.load %arg6[%c0_18, %c4] : memref<8x32xf32, #tpu.memory_space<vmem>>, vector<8x4xf32>
    tpu.vector_store %arg6[%c0_18, %c4], %39 {strides = array<i32>} : memref<8x32xf32, #tpu.memory_space<vmem>>, vector<8x4xf32>,
    %41 = vector.extract_strided_slice %6 {offsets = [0, 8], sizes = [8, 4], strides = [1, 1]} : vector<8x32xf32> to vector<8x4xf32>
    %42 = vector.extract_strided_slice %7 {offsets = [0, 8], sizes = [8, 4], strides = [1, 1]} : vector<8x32xf32> to vector<8x4xf32>
    %43 = vector.extract_strided_slice %8 {offsets = [0, 8], sizes = [8, 4], strides = [1, 1]} : vector<8x32xf32> to vector<8x4xf32>
    %cst_19 = arith.constant dense<0.000000e+00> : vector<8x8xf32>
    %44 = tpu.matmul %41, %42, %cst_19 {dimension_numbers = #tpu.dot_dimension_numbers<[1], [1], [0], [0], [0, 0, 1, 0], [], []>} : vector<8x4xf32>, vector<8x4xf32>, vector<8x8xf32> -> vector<8x8xf32>
    %cst_20 = arith.constant dense<0xFF800000> : vector<8xf32>
    %45 = vector.multi_reduction <maximumf>, %44, %cst_20 [1] : vector<8x8xf32> to vector<8xf32>
    %46 = vector.shape_cast %45 : vector<8xf32> to vector<8x1xf32>
    %47 = vector.broadcast %46 : vector<8x1xf32> to vector<8x8xf32>
    %48 = arith.subf %44, %47 : vector<8x8xf32>
    %49 = math.exp %48 : vector<8x8xf32>
    %cst_21 = arith.constant dense<0.000000e+00> : vector<8xf32>
    %50 = vector.multi_reduction <add>, %49, %cst_21 [1] : vector<8x8xf32> to vector<8xf32>
    %51 = vector.shape_cast %50 : vector<8xf32> to vector<8x1xf32>
    %cst_22 = arith.constant dense<0.000000e+00> : vector<8x4xf32>
    %52 = tpu.matmul %49, %43, %cst_22 {dimension_numbers = #tpu.dot_dimension_numbers<[1], [0], [0], [1], [0, 0, 1, 1], [], []>} : vector<8x8xf32>, vector<8x4xf32>, vector<8x4xf32> -> vector<8x4xf32>
    %53 = tpu.reciprocal %51 : vector<8x1xf32> -> vector<8x1xf32>
    %54 = vector.broadcast %53 : vector<8x1xf32> to vector<8x4xf32>
    %55 = arith.mulf %52, %54 : vector<8x4xf32>
    %c0_23 = arith.constant 0 : index
    %c8 = arith.constant 8 : index
    %56 = vector.load %arg6[%c0_23, %c8] : memref<8x32xf32, #tpu.memory_space<vmem>>, vector<8x4xf32>
    tpu.vector_store %arg6[%c0_23, %c8], %55 {strides = array<i32>} : memref<8x32xf32, #tpu.memory_space<vmem>>, vector<8x4xf32>,
    %57 = vector.extract_strided_slice %6 {offsets = [0, 12], sizes = [8, 4], strides = [1, 1]} : vector<8x32xf32> to vector<8x4xf32>
    %58 = vector.extract_strided_slice %7 {offsets = [0, 12], sizes = [8, 4], strides = [1, 1]} : vector<8x32xf32> to vector<8x4xf32>
    %59 = vector.extract_strided_slice %8 {offsets = [0, 12], sizes = [8, 4], strides = [1, 1]} : vector<8x32xf32> to vector<8x4xf32>
    %cst_24 = arith.constant dense<0.000000e+00> : vector<8x8xf32>
    %60 = tpu.matmul %57, %58, %cst_24 {dimension_numbers = #tpu.dot_dimension_numbers<[1], [1], [0], [0], [0, 0, 1, 0], [], []>} : vector<8x4xf32>, vector<8x4xf32>, vector<8x8xf32> -> vector<8x8xf32>
    %cst_25 = arith.constant dense<0xFF800000> : vector<8xf32>
    %61 = vector.multi_reduction <maximumf>, %60, %cst_25 [1] : vector<8x8xf32> to vector<8xf32>
    %62 = vector.shape_cast %61 : vector<8xf32> to vector<8x1xf32>
    %63 = vector.broadcast %62 : vector<8x1xf32> to vector<8x8xf32>
    %64 = arith.subf %60, %63 : vector<8x8xf32>
    %65 = math.exp %64 : vector<8x8xf32>
    %cst_26 = arith.constant dense<0.000000e+00> : vector<8xf32>
    %66 = vector.multi_reduction <add>, %65, %cst_26 [1] : vector<8x8xf32> to vector<8xf32>
    %67 = vector.shape_cast %66 : vector<8xf32> to vector<8x1xf32>
    %cst_27 = arith.constant dense<0.000000e+00> : vector<8x4xf32>
    %68 = tpu.matmul %65, %59, %cst_27 {dimension_numbers = #tpu.dot_dimension_numbers<[1], [0], [0], [1], [0, 0, 1, 1], [], []>} : vector<8x8xf32>, vector<8x4xf32>, vector<8x4xf32> -> vector<8x4xf32>
    %69 = tpu.reciprocal %67 : vector<8x1xf32> -> vector<8x1xf32>
    %70 = vector.broadcast %69 : vector<8x1xf32> to vector<8x4xf32>
    %71 = arith.mulf %68, %70 : vector<8x4xf32>
    %c0_28 = arith.constant 0 : index
    %c12 = arith.constant 12 : index
    %72 = vector.load %arg6[%c0_28, %c12] : memref<8x32xf32, #tpu.memory_space<vmem>>, vector<8x4xf32>
    tpu.vector_store %arg6[%c0_28, %c12], %71 {strides = array<i32>} : memref<8x32xf32, #tpu.memory_space<vmem>>, vector<8x4xf32>,
    %73 = vector.extract_strided_slice %6 {offsets = [0, 16], sizes = [8, 4], strides = [1, 1]} : vector<8x32xf32> to vector<8x4xf32>
    %74 = vector.extract_strided_slice %7 {offsets = [0, 16], sizes = [8, 4], strides = [1, 1]} : vector<8x32xf32> to vector<8x4xf32>
    %75 = vector.extract_strided_slice %8 {offsets = [0, 16], sizes = [8, 4], strides = [1, 1]} : vector<8x32xf32> to vector<8x4xf32>
    %cst_29 = arith.constant dense<0.000000e+00> : vector<8x8xf32>
    %76 = tpu.matmul %73, %74, %cst_29 {dimension_numbers = #tpu.dot_dimension_numbers<[1], [1], [0], [0], [0, 0, 1, 0], [], []>} : vector<8x4xf32>, vector<8x4xf32>, vector<8x8xf32> -> vector<8x8xf32>
    %cst_30 = arith.constant dense<0xFF800000> : vector<8xf32>
    %77 = vector.multi_reduction <maximumf>, %76, %cst_30 [1] : vector<8x8xf32> to vector<8xf32>
    %78 = vector.shape_cast %77 : vector<8xf32> to vector<8x1xf32>
    %79 = vector.broadcast %78 : vector<8x1xf32> to vector<8x8xf32>
    %80 = arith.subf %76, %79 : vector<8x8xf32>
    %81 = math.exp %80 : vector<8x8xf32>
    %cst_31 = arith.constant dense<0.000000e+00> : vector<8xf32>
    %82 = vector.multi_reduction <add>, %81, %cst_31 [1] : vector<8x8xf32> to vector<8xf32>
    %83 = vector.shape_cast %82 : vector<8xf32> to vector<8x1xf32>
    %cst_32 = arith.constant dense<0.000000e+00> : vector<8x4xf32>
    %84 = tpu.matmul %81, %75, %cst_32 {dimension_numbers = #tpu.dot_dimension_numbers<[1], [0], [0], [1], [0, 0, 1, 1], [], []>} : vector<8x8xf32>, vector<8x4xf32>, vector<8x4xf32> -> vector<8x4xf32>
    %85 = tpu.reciprocal %83 : vector<8x1xf32> -> vector<8x1xf32>
    %86 = vector.broadcast %85 : vector<8x1xf32> to vector<8x4xf32>
    %87 = arith.mulf %84, %86 : vector<8x4xf32>
    %c0_33 = arith.constant 0 : index
    %c16 = arith.constant 16 : index
    %88 = vector.load %arg6[%c0_33, %c16] : memref<8x32xf32, #tpu.memory_space<vmem>>, vector<8x4xf32>
    tpu.vector_store %arg6[%c0_33, %c16], %87 {strides = array<i32>} : memref<8x32xf32, #tpu.memory_space<vmem>>, vector<8x4xf32>,
    %89 = vector.extract_strided_slice %6 {offsets = [0, 20], sizes = [8, 4], strides = [1, 1]} : vector<8x32xf32> to vector<8x4xf32>
    %90 = vector.extract_strided_slice %7 {offsets = [0, 20], sizes = [8, 4], strides = [1, 1]} : vector<8x32xf32> to vector<8x4xf32>
    %91 = vector.extract_strided_slice %8 {offsets = [0, 20], sizes = [8, 4], strides = [1, 1]} : vector<8x32xf32> to vector<8x4xf32>
    %cst_34 = arith.constant dense<0.000000e+00> : vector<8x8xf32>
    %92 = tpu.matmul %89, %90, %cst_34 {dimension_numbers = #tpu.dot_dimension_numbers<[1], [1], [0], [0], [0, 0, 1, 0], [], []>} : vector<8x4xf32>, vector<8x4xf32>, vector<8x8xf32> -> vector<8x8xf32>
    %cst_35 = arith.constant dense<0xFF800000> : vector<8xf32>
    %93 = vector.multi_reduction <maximumf>, %92, %cst_35 [1] : vector<8x8xf32> to vector<8xf32>
    %94 = vector.shape_cast %93 : vector<8xf32> to vector<8x1xf32>
    %95 = vector.broadcast %94 : vector<8x1xf32> to vector<8x8xf32>
    %96 = arith.subf %92, %95 : vector<8x8xf32>
    %97 = math.exp %96 : vector<8x8xf32>
    %cst_36 = arith.constant dense<0.000000e+00> : vector<8xf32>
    %98 = vector.multi_reduction <add>, %97, %cst_36 [1] : vector<8x8xf32> to vector<8xf32>
    %99 = vector.shape_cast %98 : vector<8xf32> to vector<8x1xf32>
    %cst_37 = arith.constant dense<0.000000e+00> : vector<8x4xf32>
    %100 = tpu.matmul %97, %91, %cst_37 {dimension_numbers = #tpu.dot_dimension_numbers<[1], [0], [0], [1], [0, 0, 1, 1], [], []>} : vector<8x8xf32>, vector<8x4xf32>, vector<8x4xf32> -> vector<8x4xf32>
    %101 = tpu.reciprocal %99 : vector<8x1xf32> -> vector<8x1xf32>
    %102 = vector.broadcast %101 : vector<8x1xf32> to vector<8x4xf32>
    %103 = arith.mulf %100, %102 : vector<8x4xf32>
    %c0_38 = arith.constant 0 : index
    %c20 = arith.constant 20 : index
    %104 = vector.load %arg6[%c0_38, %c20] : memref<8x32xf32, #tpu.memory_space<vmem>>, vector<8x4xf32>
    tpu.vector_store %arg6[%c0_38, %c20], %103 {strides = array<i32>} : memref<8x32xf32, #tpu.memory_space<vmem>>, vector<8x4xf32>,
    %105 = vector.extract_strided_slice %6 {offsets = [0, 24], sizes = [8, 4], strides = [1, 1]} : vector<8x32xf32> to vector<8x4xf32>
    %106 = vector.extract_strided_slice %7 {offsets = [0, 24], sizes = [8, 4], strides = [1, 1]} : vector<8x32xf32> to vector<8x4xf32>
    %107 = vector.extract_strided_slice %8 {offsets = [0, 24], sizes = [8, 4], strides = [1, 1]} : vector<8x32xf32> to vector<8x4xf32>
    %cst_39 = arith.constant dense<0.000000e+00> : vector<8x8xf32>
    %108 = tpu.matmul %105, %106, %cst_39 {dimension_numbers = #tpu.dot_dimension_numbers<[1], [1], [0], [0], [0, 0, 1, 0], [], []>} : vector<8x4xf32>, vector<8x4xf32>, vector<8x8xf32> -> vector<8x8xf32>
    %cst_40 = arith.constant dense<0xFF800000> : vector<8xf32>
    %109 = vector.multi_reduction <maximumf>, %108, %cst_40 [1] : vector<8x8xf32> to vector<8xf32>
    %110 = vector.shape_cast %109 : vector<8xf32> to vector<8x1xf32>
    %111 = vector.broadcast %110 : vector<8x1xf32> to vector<8x8xf32>
    %112 = arith.subf %108, %111 : vector<8x8xf32>
    %113 = math.exp %112 : vector<8x8xf32>
    %cst_41 = arith.constant dense<0.000000e+00> : vector<8xf32>
    %114 = vector.multi_reduction <add>, %113, %cst_41 [1] : vector<8x8xf32> to vector<8xf32>
    %115 = vector.shape_cast %114 : vector<8xf32> to vector<8x1xf32>
    %cst_42 = arith.constant dense<0.000000e+00> : vector<8x4xf32>
    %116 = tpu.matmul %113, %107, %cst_42 {dimension_numbers = #tpu.dot_dimension_numbers<[1], [0], [0], [1], [0, 0, 1, 1], [], []>} : vector<8x8xf32>, vector<8x4xf32>, vector<8x4xf32> -> vector<8x4xf32>
    %117 = tpu.reciprocal %115 : vector<8x1xf32> -> vector<8x1xf32>
    %118 = vector.broadcast %117 : vector<8x1xf32> to vector<8x4xf32>
    %119 = arith.mulf %116, %118 : vector<8x4xf32>
    %c0_43 = arith.constant 0 : index
    %c24 = arith.constant 24 : index
    %120 = vector.load %arg6[%c0_43, %c24] : memref<8x32xf32, #tpu.memory_space<vmem>>, vector<8x4xf32>
    tpu.vector_store %arg6[%c0_43, %c24], %119 {strides = array<i32>} : memref<8x32xf32, #tpu.memory_space<vmem>>, vector<8x4xf32>,
    %121 = vector.extract_strided_slice %6 {offsets = [0, 28], sizes = [8, 4], strides = [1, 1]} : vector<8x32xf32> to vector<8x4xf32>
    %122 = vector.extract_strided_slice %7 {offsets = [0, 28], sizes = [8, 4], strides = [1, 1]} : vector<8x32xf32> to vector<8x4xf32>
    %123 = vector.extract_strided_slice %8 {offsets = [0, 28], sizes = [8, 4], strides = [1, 1]} : vector<8x32xf32> to vector<8x4xf32>
    %cst_44 = arith.constant dense<0.000000e+00> : vector<8x8xf32>
    %124 = tpu.matmul %121, %122, %cst_44 {dimension_numbers = #tpu.dot_dimension_numbers<[1], [1], [0], [0], [0, 0, 1, 0], [], []>} : vector<8x4xf32>, vector<8x4xf32>, vector<8x8xf32> -> vector<8x8xf32>
    %cst_45 = arith.constant dense<0xFF800000> : vector<8xf32>
    %125 = vector.multi_reduction <maximumf>, %124, %cst_45 [1] : vector<8x8xf32> to vector<8xf32>
    %126 = vector.shape_cast %125 : vector<8xf32> to vector<8x1xf32>
    %127 = vector.broadcast %126 : vector<8x1xf32> to vector<8x8xf32>
    %128 = arith.subf %124, %127 : vector<8x8xf32>
    %129 = math.exp %128 : vector<8x8xf32>
    %cst_46 = arith.constant dense<0.000000e+00> : vector<8xf32>
    %130 = vector.multi_reduction <add>, %129, %cst_46 [1] : vector<8x8xf32> to vector<8xf32>
    %131 = vector.shape_cast %130 : vector<8xf32> to vector<8x1xf32>
    %cst_47 = arith.constant dense<0.000000e+00> : vector<8x4xf32>
    %132 = tpu.matmul %129, %123, %cst_47 {dimension_numbers = #tpu.dot_dimension_numbers<[1], [0], [0], [1], [0, 0, 1, 1], [], []>} : vector<8x8xf32>, vector<8x4xf32>, vector<8x4xf32> -> vector<8x4xf32>
    %133 = tpu.reciprocal %131 : vector<8x1xf32> -> vector<8x1xf32>
    %134 = vector.broadcast %133 : vector<8x1xf32> to vector<8x4xf32>
    %135 = arith.mulf %132, %134 : vector<8x4xf32>
    %c0_48 = arith.constant 0 : index
    %c28 = arith.constant 28 : index
    %136 = vector.load %arg6[%c0_48, %c28] : memref<8x32xf32, #tpu.memory_space<vmem>>, vector<8x4xf32>
    tpu.vector_store %arg6[%c0_48, %c28], %135 {strides = array<i32>} : memref<8x32xf32, #tpu.memory_space<vmem>>, vector<8x4xf32>,
    %c0_49 = arith.constant 0 : index
    %c0_50 = arith.constant 0 : index
    %137 = vector.load %arg6[%c0_49, %c0_50] : memref<8x32xf32, #tpu.memory_space<vmem>>, vector<8x32xf32>
    %cst_51 = arith.constant dense<0.000000e+00> : vector<8x32xf32>
    %138 = tpu.matmul %137, %3, %cst_51 {dimension_numbers = #tpu.dot_dimension_numbers<[1], [0], [0], [1], [0, 0, 1, 1], [], []>} : vector<8x32xf32>, vector<32x32xf32>, vector<8x32xf32> -> vector<8x32xf32>
    %139 = vector.broadcast %4 : vector<1x32xf32> to vector<8x32xf32>
    %140 = arith.addf %138, %139 : vector<8x32xf32>
    %c0_52 = arith.constant 0 : index
    %c0_53 = arith.constant 0 : index
    %c0_54 = arith.constant 0 : index
    %141 = vector.load %arg5[%c0_52, %c0_53, %c0_54] : memref<1x8x32xf32, #tpu.memory_space<vmem>>, vector<1x8x32xf32>
    %142 = vector.shape_cast %141 : vector<1x8x32xf32> to vector<8x32xf32>
    %143 = vector.shape_cast %140 : vector<8x32xf32> to vector<1x8x32xf32>
    tpu.vector_store %arg5[%c0_52, %c0_53, %c0_54], %143 {strides = array<i32>} : memref<1x8x32xf32, #tpu.memory_space<vmem>>, vector<1x8x32xf32>,
    return
  }
  func.func @transform_0(%arg0: i32) -> (i32, i32, i32) {
    %c0_i32 = arith.constant 0 : i32
    %c0_i32_0 = arith.constant 0 : i32
    %c0_i32_1 = arith.constant 0 : i32
    return %arg0, %c0_i32, %c0_i32_0 : i32, i32, i32
  }
  func.func @transform_1(%arg0: i32) -> (i32, i32) {
    %c0_i32 = arith.constant 0 : i32
    %c0_i32_0 = arith.constant 0 : i32
    %c0_i32_1 = arith.constant 0 : i32
    return %c0_i32, %c0_i32_0 : i32, i32
  }
  func.func @transform_2(%arg0: i32) -> (i32, i32) {
    %c0_i32 = arith.constant 0 : i32
    %c0_i32_0 = arith.constant 0 : i32
    %c0_i32_1 = arith.constant 0 : i32
    return %c0_i32, %c0_i32_0 : i32, i32
  }
  func.func @transform_3(%arg0: i32) -> (i32, i32) {
    %c0_i32 = arith.constant 0 : i32
    %c0_i32_0 = arith.constant 0 : i32
    %c0_i32_1 = arith.constant 0 : i32
    return %c0_i32, %c0_i32_0 : i32, i32
  }
  func.func @transform_4(%arg0: i32) -> (i32, i32, i32) {
    %c0_i32 = arith.constant 0 : i32
    %c0_i32_0 = arith.constant 0 : i32
    %c0_i32_1 = arith.constant 0 : i32
    return %arg0, %c0_i32, %c0_i32_0 : i32, i32, i32
  }
}

</mosaic_0001>

<bundles_post_ra>
// kernel: tpu_custom_call.1
= control target key start
LH: loop header
LB: loop body
LE: loop exit
PB: predicated region body
PF: predicated region fallthrough
CT: control target
= control target key end

     0   :  { %9 = vsyncpa [#allocation4], 0  ;;  %s2816_s0 = inlined_call_operand.hbm [shape: f32[2,8,32], index: 0, kind: input, shape index: {}]   ;;  %s2817_s1 = inlined_call_operand.hbm [shape: f32[32,96], index: 1, kind: input, shape index: {}]   ;;  %s2818_s2 = inlined_call_operand.hbm [shape: f32[32,32], index: 2, kind: input, shape index: {}]   ;;  %s2819_s3 = inlined_call_operand.vmem [shape: f32[1,32], index: 3, kind: input, shape index: {}]   ;;  %s2820_s4 = inlined_call_operand.hbm [shape: f32[2,8,32], index: 4, kind: output, shape index: {}]  }
   0x1   :  { %11 = vsyncpa [#allocation4 + $0x1], 0 }
   0x2   :  { %12 = vsyncpa [#allocation7], 0 }
   0x3   :  { %13 = vsyncpa [#allocation5], 0 }
   0x4   :  { %15 = vsyncpa [#allocation5 + $0x1], 0  ;;  %s2429_s15 = smov 0   ;;  %s2431_s16 = smov 0  }
   0x5   :  { %s2433_s17 = smov 0   ;;  %s2435_s18 = smov 0  }
   0x6 LB: > { %s2450_s19 = sadd.s32 4294967295, %s2363_s18   ;;  %s1874_s20 = sadd.s32 4294967294, %s2363_s18   ;;  %s2363_s18 = sphi %s2435_s18, %s2840_s18   ;;  %s2359_s17 = sphi %s2433_s17, %s2839_s17   ;;  %s2355_s16 = sphi %s2431_s16, %s2838_s16   ;;  %s2351_s15 = sphi %s2429_s15, %s2837_s15  }
   0x7   : > { %p41_p0 = scmp.ne.s32.totalorder %s2355_s16, %s2351_s15  ;;  %p2821_p1 = scmp.eq.s32.totalorder %s2450_s19, 0 }
   0x8   : > { %p134_p3 = scmp.eq.s32.totalorder %s1874_s20, 1  ;;  %p1875_p5 = scmp.ge.s32.totalorder %s2363_s18, 1 }
   0x9   : > { %p2459_p4 = por %p2821_p1, %p41_p0  ;;  %p141_p7 = scmp.lt.s32.totalorder %s2363_s18, 3 }
   0xa   : > { %p2464_p6 = por %p134_p3, %p41_p0  ;;  %s2365_s24 = smov [#allocation6]  }
   0xb   : > { %s2824_s21 = scalar_select %p2459_p4, 1, 0 }
   0xc   : > { %s2825_s22 = scalar_select %p2464_p6, 1, 0 }
   0xd   : > { %p2469_p8 = pnand %p1875_p5, %p141_p7  ;;  %s153_s25 = sshll.u32 %s2365_s24, 4  ;;  %s2473_s25 = int_to_ptr.vmem [resolvable:$true] %s153_s25 }
   0xe   : > { %s2366_s27 = smov [#allocation8]   ;;  %s2207_s5 = scalar_lea.hbm %s2817_s1, 512 }
   0xf   : > { %p2085_p9 = pneg %p2469_p8  ;;  %s166_s28 = sshll.u32 %s2366_s27, 4  ;;  %s2484_s28 = int_to_ptr.vmem [resolvable:$true] %s166_s28 }
  0x10   : > { %p2208_p12 = scmp.ne.s32.totalorder %s2817_s1, %s2207_s5  ;;  %p2214_p5 = scmp.lt.u32.totalorder %s2207_s5, %s2817_s1 }
  0x11   : > { %p2480_p11 = pnand %p2085_p9, %p2821_p1 }
  0x13   : > { %p2209_p13 = pneg %p2480_p11 }
  0x15   : > { %p2210_p0 = pnand %p2209_p13, %p2208_p12 }
  0x17   : > { %p2211_p3 = pneg %p2210_p0 }
  0x19   : > { %p2216_p7 = pnand %p2214_p5, %p2211_p3 }
  0x1b   : > { %2219 = shalt.err (!%p2216_p7)
}
  0x1c   : > { %s2220_s10 = scalar_lea.vmem %s2473_s25, 512  ;;  %p2228_p2 = scmp.lt.s32.totalorder %s2473_s25, %s2473_s25 }
  0x1d   : > { %p2221_p9 = scmp.ne.s32.totalorder %s2473_s25, %s2220_s10  ;;  %p2229_p12 = scmp.lt.s32.totalorder %s2220_s10, %s2220_s10 }
  0x1f   : > { %p2223_p10 = pnand %p2221_p9, %p2209_p13  ;;  %p2230_p0 = por %p2229_p12, %p2228_p2 }
  0x21   : > { %p2224_p1 = pneg %p2223_p10 }
  0x23   : > { %p2231_p6 = pnand %p2230_p0, %p2224_p1 }
  0x25   : > { %2234 = shalt.err (!%p2231_p6)
}
  0x26   : > { %s2367_s11 = smov 128   ;;  %s2368_s12 = smov 8  }
  0x27   : > { %2088 = dma.hbm_to_vmem [thread:$0]  (!%p2480_p11), %s2817_s1, 512, %s2473_s25, [#allocation7], %s2367_s11, %s2367_s11, %s2368_s12  }
  0x28   : > { %s2235_s27 = scalar_lea.hbm %s2818_s2, 512 }
  0x29   : > { %p2236_p2 = scmp.ne.s32.totalorder %s2818_s2, %s2235_s27  ;;  %p2242_p10 = scmp.lt.u32.totalorder %s2235_s27, %s2818_s2 }
  0x2b   : > { %p2238_p1 = pnand %p2236_p2, %p2209_p13 }
  0x2d   : > { %p2239_p6 = pneg %p2238_p1 }
  0x2f   : > { %p2244_p3 = pnand %p2242_p10, %p2239_p6 }
  0x31   : > { %2247 = shalt.err (!%p2244_p3)
}
  0x32   : > { %s2248_s25 = scalar_lea.vmem %s2484_s28, 512  ;;  %p2256_p12 = scmp.lt.s32.totalorder %s2484_s28, %s2484_s28 }
  0x33   : > { %p2249_p5 = scmp.ne.s32.totalorder %s2484_s28, %s2248_s25  ;;  %p2257_p0 = scmp.lt.s32.totalorder %s2248_s25, %s2248_s25 }
  0x35   : > { %p2251_p7 = pnand %p2249_p5, %p2209_p13  ;;  %p2258_p2 = por %p2257_p0, %p2256_p12 }
  0x37   : > { %p2252_p9 = pneg %p2251_p7 }
  0x39   : > { %p2259_p1 = pnand %p2258_p2, %p2252_p9 }
  0x3b   : > { %2262 = shalt.err (!%p2259_p1)
}
  0x3c   : > { %2091 = dma.hbm_to_vmem [thread:$0]  (!%p2480_p11), %s2818_s2, 512, %s2484_s28, [#allocation7], %s2367_s11, %s2367_s11, %s2368_s12  }
  0x3d   : > { %s2539_s9 = sadd.s32 1, %s2363_s18   ;;  %s28_s26 = sadd.s32 1, %s2359_s17 }
  0x3e   : > { %s25_s10 = ssub.s32 %s2363_s18, %s2539_s9  ;;  %p35_p13 = scmp.ne.s32.totalorder %s2359_s17, %s2355_s16 }
  0x3f   : > { %p26_p6 = scmp.eq.s32.totalorder %s25_s10, 0  ;;  %p36_p10 = scmp.eq.s32.totalorder %s2363_s18, 0 }
  0x40   : > { %p2828_p3 = scmp.eq.s32.totalorder %s2450_s19, 1  ;;  %p2102_p7 = scmp.lt.s32.totalorder %s2363_s18, 2 }
  0x41   : > { %s2555_s14 = scalar_select %p26_p6, %s2359_s17, %s28_s26  }
  0x42   : > { %p2549_p5 = por %p2828_p3, %p35_p13  ;;  %p37_p9 = por %p36_p10, %p35_p13 }
  0x43   : > { %s183_s20 = sand.u32 1, %s2359_s17   ;;  %s1880_s28 = sshll.u32 %s2363_s18, 7 }
  0x44   : > { %s2829_s13 = scalar_select %p2549_p5, 1, 0 }
  0x45   : > { %s1879_s24 = sshll.u32 %s183_s20, 3  ;;  %s2562_s27 = scalar_lea.hbm %s2816_s0, %s1880_s28 }
  0x46   : > { %s187_s29 = scalar_lea.vmem [#allocation3], %s1879_s24  ;;  %p2566_p11 = pnand %p2102_p7, %p37_p9 }
  0x47   : > { %s194_s30 = sshll.u32 %s187_s29, 4  ;;  %s184_s6 = scalar_lea.sflag [#allocation4], %s183_s20  ;;  %s2564_s30 = int_to_ptr.vmem [resolvable:$true] %s194_s30 }
  0x48   : > { %s2263_s25 = scalar_lea.hbm %s2562_s27, 128  ;;  %p2265_p0 = pneg %p2566_p11 }
  0x49   : > { %p2264_p12 = scmp.ne.s32.totalorder %s2562_s27, %s2263_s25  ;;  %s2268_s26 = scalar_lea.hbm %s2816_s0, 256 }
  0x4a   : > { %p2269_p13 = scmp.lt.u32.totalorder %s2562_s27, %s2816_s0  ;;  %p2270_p6 = scmp.lt.u32.totalorder %s2268_s26, %s2263_s25 }
  0x4b   : > { %p2266_p2 = pnand %p2265_p0, %p2264_p12  ;;  %p2272_p3 = scmp.lt.u32.totalorder %s2263_s25, %s2562_s27 }
  0x4c   : > { %p2271_p10 = por %p2270_p6, %p2269_p13 }
  0x4d   : > { %p2267_p1 = pneg %p2266_p2 }
  0x4e   : > { %p2273_p7 = por %p2272_p3, %p2271_p10 }
  0x50   : > { %p2274_p9 = pnand %p2273_p7, %p2267_p1 }
  0x52   : > { %2277 = shalt.err (!%p2274_p9)
}
  0x53   : > { %s2278_s20 = scalar_lea.vmem %s2564_s30, 128  ;;  %s2369_s28 = smov [#allocation3]  }
  0x54   : > { %p2279_p12 = scmp.ne.s32.totalorder %s2564_s30, %s2278_s20  ;;  %s2283_s11 = sshll.u32 %s2369_s28, 4  ;;  %s2284_s11 = int_to_ptr.vmem [resolvable:$false] %s2283_s11 }
  0x55   : > { %s2285_s12 = scalar_lea.vmem %s2284_s11, 256  ;;  %p2286_p4 = scmp.lt.s32.totalorder %s2564_s30, %s2284_s11 }
  0x56   : > { %p2281_p2 = pnand %p2279_p12, %p2265_p0  ;;  %p2287_p13 = scmp.lt.s32.totalorder %s2285_s12, %s2278_s20 }
  0x58   : > { %p2282_p5 = pneg %p2281_p2  ;;  %p2288_p6 = por %p2287_p13, %p2286_p4 }
  0x5a   : > { %p2289_p10 = pnand %p2288_p6, %p2282_p5 }
  0x5c   : > { %2292 = shalt.err (!%p2289_p10)
}
  0x5d   : > { %2095 = dma.hbm_to_vmem [thread:$0]  (!%p2566_p11), %s2562_s27, 128, %s2564_s30, %s184_s6  }
  0x5e   : > { %203 = sbr.rel (%p2469_p8) target bundleno = 1778 (0x6f2), region = 36  ;;  %s2598_s29 = sand.u32 (!%p2469_p8), 1, %s2355_s16  }
  0x5f   : > { %s1882_s25 = sshll.u32 (!%p2469_p8), %s2598_s29, 3  ;;  %s206_s7 = scalar_lea.sflag (!%p2469_p8), [#allocation4], %s2598_s29 }
  0x60   : > { %s209_s8 = scalar_lea.vmem (!%p2469_p8), [#allocation3], %s1882_s25  ;;  %p2831_p4 = scmp.ne.s32.totalorder (!%p2469_p8), %s2824_s21, 0 }
  0x65   : > { %2338 = dma.done.wait (%p2831_p4), %s206_s7, 128  }
  0x66   : > { %2340 = vsyncadd (%p2831_p4), %s206_s7, 4294967168  ;;  %p2832_p5 = scmp.eq.s32.totalorder %s2450_s19, 0 }
  0x68   : > { %2342 = dma.done.wait (%p2832_p5), [#allocation7], 1024   ;;  %p2833_p8 = pmov %p2832_p5 }
  0x69   : > { %v2370_v0 = vmov 0.0|0.0   ;;  %vm2371_vm0 = vmmov 0   ;;  %v2372_v1 = vmov 0.0   ;;  %v243_v2 = vld [vmem:[#allocation6] sm:$0xff]  ;;  %v244_v3 = vld [vmem:[#allocation6 + $0x8] sm:$0xff]  ;;  %v245_v4 = vld [vmem:[#allocation6 + $0x10] sm:$0xff] }
  0x6a   : > { %2344 = vsyncadd (%p2833_p8), [#allocation7], 4294966272  ;;  %2061 = vmatprep.subr.bf16.mxu0 %v2370_v0  ;;  %1967 = vmatprep.mubr.msk.f32.mxu0 %vm2371_vm0, %v2372_v1  ;;  %v2062_v5 = vpack.c.bf16 %v244_v3, %v243_v2  ;;  %v246_v6 = vld [vmem:[#allocation6 + $0x18] sm:$0xff]  ;;  %vm252_vm1 = vcmask 261120   ;;  %s2373_s21 = smov 64   ;;  %s2374_s23 = smov 96  }
  0x6b   : > { %1970 = vmatprep.subr.mxu1 %v2372_v1  ;;  %1972 = vmatprep.mubr.msk.f32.mxu1 %vm2371_vm0, %v2372_v1  ;;  %v2065_v7 = vpack.c.bf16 %v246_v6, %v245_v4  ;;  %v242_v8 = vld [vmem:[%s209_s8] sm:$0xff]  ;;  %s2375_s27 = smov 92   ;;  %s2376_s30 = smov 124   ;;  %vm329_vm2 = vcmask 31744   ;;  %vm404_vm3 = vcmask 64512   ;;  %vm662_vm4 = vcmask 64544  }
  0x6c   : > { %2063 = vmatpush3.bf16.msra.mxu0 %v2062_v5  ;;  %s2377_s5 = smov 88   ;;  %s2378_s6 = smov 120   ;;  %vm833_vm5 = vcmask 97344   ;;  %vm1004_vm6 = vcmask 130144   ;;  %vm1175_vm7 = vcmask 162944   ;;  %vm1346_vm8 = vcmask 195744  }
  0x6d   : > { %2064 = vmatprep.subr.bf16.mxu0 %v2370_v0  ;;  %s2379_s26 = smov 84   ;;  %s2380_s10 = smov 116   ;;  %vm1517_vm9 = vcmask 228544   ;;  %vm1688_vm10 = vcmask 261344  }
  0x6e   : > { %s2381_s24 = smov 80   ;;  %s2382_s20 = smov 112  }
  0x6f   : > { %s2383_s28 = smov 108   ;;  %s2384_s11 = smov 72  }
  0x70   : > { %2066 = vmatpush3.bf16.msra.mxu0 %v2065_v7  ;;  %s2385_s12 = smov 104   ;;  %s2386_s7 = smov 68  }
  0x71   : > { %1990 = vmatprep.subr.mxu0 %v2372_v1  ;;  %s2387_s8 = smov 100   ;;  %p2834_p0 = scmp.ne.s32.totalorder %s2829_s13, 0 }
  0x73   : > { %1968 = vmatmul.mubr.msk.f32.vlgmr.msra.gmra.mrb[0].mxu0 %vm252_vm1, %v242_v8 }
  0x74   : > { %1992 = vmatprep.mubr.msk.f32.mxu0 %vm2371_vm0, %v2372_v1 }
 0x146   : > { %v2623_v9 = vpop.f32.mrb[0].mxu0 }
 0x147   : > { %414 = vrot.lane.b32.xlu1 %v2623_v9, %s2373_s21  ;;  %327 = vrot.lane.b32.xlu0 %v2623_v9, %s2374_s23  ;;  %v1969_v10 = vpop.f32.mrb[1].mxu0  ;;  %s2388_s21 = smov 56   ;;  %s2389_s23 = smov 76  }
 0x14b   : > { %495 = vrot.lane.b32.xlu1 %v2623_v9, %s2375_s27  ;;  %s2390_s27 = smov 60  }
 0x14f   : > { %493 = vrot.lane.b32.xlu1 %v2623_v9, %s2376_s30  ;;  %s2391_s30 = smov 44  }
 0x153   : > { %666 = vrot.lane.b32.xlu1 %v2623_v9, %s2377_s5  ;;  %s2392_s5 = smov 52  }
 0x157   : > { %664 = vrot.lane.b32.xlu1 %v2623_v9, %s2378_s6  ;;  %s2393_s6 = smov 36  }
 0x15b   : > { %837 = vrot.lane.b32.xlu1 %v2623_v9, %s2379_s26  ;;  %s2394_s26 = smov 48  }
 0x15f   : > { %835 = vrot.lane.b32.xlu1 %v2623_v9, %s2380_s10  ;;  %s2395_s10 = smov 40  }
 0x163   : > { %1008 = vrot.lane.b32.xlu1 %v2623_v9, %s2381_s24  ;;  %s2396_s24 = smov 4  }
 0x167   : > { %1006 = vrot.lane.b32.xlu1 %v2623_v9, %s2382_s20  ;;  %s2397_s20 = smov 8  }
 0x16b   : > { %1177 = vrot.lane.b32.xlu1 %v2623_v9, %s2383_s28  ;;  %s2398_s28 = smov 12  }
 0x16f   : > { %1350 = vrot.lane.b32.xlu1 %v2623_v9, %s2384_s11  ;;  %s2399_s11 = smov 16  }
 0x173   : > { %1348 = vrot.lane.b32.xlu1 %v2623_v9, %s2385_s12  ;;  %s2400_s12 = smov 20  }
 0x177   : > { %1521 = vrot.lane.b32.xlu1 %v2623_v9, %s2386_s7  ;;  %s2401_s7 = smov 24  }
 0x17b   : > { %1519 = vrot.lane.b32.xlu1 %v2623_v9, %s2387_s8  ;;  %s2402_s8 = smov 28  }
 0x17f   : > { %751 = vrot.lane.b32.xlu1 %v2623_v9, %s2388_s21 }
 0x1b9   : > { %v415_v11 = vpop.permute.xlu1 %414  ;;  %v328_v12 = vpop.permute.xlu0 %327 }
 0x1ba   : > { %1971 = vmatpush3.xpose.msk.msra.mxu1 %vm329_vm2, %v328_v12 }
 0x1bb   : > { %1975 = vmatprep.subr.mxu1 %v2372_v1 }
 0x1bd   : > { %v2643_v13 = vpop.permute.xlu1 %495  ;;  %1973 = vmatmul.mubr.msk.f32.vlgmr.msra.gmra.mrb[0].mxu1 %vm329_vm2, %v2623_v9 }
 0x1be   : > { %1976 = vmatpush3.msra.mxu1 %v415_v11  ;;  %1977 = vmatprep.mubr.msk.f32.mxu1 %vm2371_vm0, %v2372_v1 }
 0x1bf   : > { %1980 = vmatprep.subr.mxu1 %v2372_v1 }
 0x1c1   : > { %v2650_v14 = vpop.permute.xlu1 %493 }
 0x1c5   : > { %v667_v15 = vpop.permute.xlu1 %666 }
 0x1c6   : > { %1991 = vmatpush3.xpose.msk.msra.mxu0 %vm329_vm2, %v667_v15 }
 0x1c7   : > { %2000 = vmatprep.subr.mxu0 %v2372_v1 }
 0x1c9   : > { %v665_v16 = vpop.permute.xlu1 %664 }
 0x1ca   : > { %1993 = vmatmul.mubr.msk.f32.vlgmr.msra.gmra.mrb[2].mxu0 %vm329_vm2, %v665_v16 }
 0x1cb   : > { %2002 = vmatprep.mubr.msk.f32.mxu0 %vm2371_vm0, %v2372_v1 }
 0x1cd   : > { %v838_v17 = vpop.permute.xlu1 %837 }
 0x1ce   : > { %2001 = vmatpush3.xpose.msk.msra.mxu0 %vm329_vm2, %v838_v17 }
 0x1cf   : > { %2010 = vmatprep.subr.mxu0 %v2372_v1 }
 0x1d1   : > { %v836_v18 = vpop.permute.xlu1 %835 }
 0x1d2   : > { %2003 = vmatmul.mubr.msk.f32.vlgmr.msra.gmra.mrb[4].mxu0 %vm329_vm2, %v836_v18 }
 0x1d3   : > { %2012 = vmatprep.mubr.msk.f32.mxu0 %vm2371_vm0, %v2372_v1 }
 0x1d5   : > { %v1009_v19 = vpop.permute.xlu1 %1008 }
 0x1d6   : > { %2011 = vmatpush3.xpose.msk.msra.mxu0 %vm329_vm2, %v1009_v19 }
 0x1d7   : > { %2020 = vmatprep.subr.mxu0 %v2372_v1 }
 0x1d9   : > { %v1007_v20 = vpop.permute.xlu1 %1006 }
 0x1da   : > { %2013 = vmatmul.mubr.msk.f32.vlgmr.msra.gmra.mrb[6].mxu0 %vm329_vm2, %v1007_v20 }
 0x1db   : > { %2022 = vmatprep.mubr.msk.f32.mxu0 %vm2371_vm0, %v2372_v1 }
 0x1dd   : > { %v1178_v33 = vpop.permute.xlu1 %1177 }
 0x1e1   : > { %v1351_v34 = vpop.permute.xlu1 %1350 }
 0x1e5   : > { %v1349_v37 = vpop.permute.xlu1 %1348 }
 0x1e9   : > { %v1522_v40 = vpop.permute.xlu1 %1521 }
 0x1ed   : > { %v1520_v42 = vpop.permute.xlu1 %1519 }
 0x1f1   : > { %v752_v11 = vpop.permute.xlu1 %751 }
 0x290   : > { %v400_v21 = vpop.f32.mrb[0].mxu1 }
 0x291   : > { %v1974_v22 = vpop.f32.mrb[1].mxu1  ;;  %v405_v23 = vsel %vm404_vm3, %v400_v21, -inf }
 0x292   : > { %406 = vmax.xlane.f32.xlu0 %v405_v23 }
 0x29d   : > { %v2668_v24 = vpop.f32.mrb[2].mxu0 }
 0x29e   : > { %v1994_v25 = vpop.f32.mrb[3].mxu0  ;;  %v742_v30 = vsel %vm404_vm3, %v2668_v24, -inf }
 0x2a5   : > { %v2670_v26 = vpop.f32.mrb[4].mxu0 }
 0x2a6   : > { %v2004_v27 = vpop.f32.mrb[5].mxu0  ;;  %v913_v31 = vsel %vm404_vm3, %v2670_v26, -inf }
 0x2a8   : > { %1179 = vrot.lane.b32.xlu0 %v2623_v9, %s2389_s23 }
 0x2ac   : > { %580 = vrot.lane.b32.xlu0 %v2623_v9, %s2390_s27  ;;  %s1914_s27 = sshll.u32 %s2450_s19, 7 }
 0x2ad   : > { %v2674_v28 = vpop.f32.mrb[6].mxu0 }
 0x2ae   : > { %v2014_v29 = vpop.f32.mrb[7].mxu0  ;;  %v1084_v32 = vsel %vm404_vm3, %v2674_v28, -inf }
 0x2cb   : > { %743 = vmax.xlane.f32.xlu0 %v742_v30 }
 0x2cf   : > { %914 = vmax.xlane.f32.xlu0 %v913_v31 }
 0x2d3   : > { %1085 = vmax.xlane.f32.xlu0 %v1084_v32 }
 0x31f   : > { %v407_v35 = vpop.xlane.xlu0 %406 }
 0x320   : > { %v408_v36 = vsub.f32 %v400_v21, %v407_v35 }
 0x322   : > { %v409_v38 = vmul.f32 1.442695, %v408_v36 }
 0x323   : > { %v1180_v39 = vpop.permute.xlu0 %1179 }
 0x324   : > { %2175 = vpow2.f32 %v409_v38  ;;  %2021 = vmatpush3.xpose.msk.msra.mxu0 %vm329_vm2, %v1180_v39 }
 0x325   : > { %2030 = vmatprep.subr.mxu0 %v2372_v1 }
 0x327   : > { %2023 = vmatmul.mubr.msk.f32.vlgmr.msra.gmra.mrb[8].mxu0 %vm329_vm2, %v1178_v33  ;;  %v581_v43 = vpop.permute.xlu0 %580 }
 0x328   : > { %2031 = vmatpush3.xpose.msk.msra.mxu0 %vm329_vm2, %v1351_v34  ;;  %2032 = vmatprep.mubr.msk.f32.mxu0 %vm2371_vm0, %v2372_v1 }
 0x329   : > { %2040 = vmatprep.subr.mxu0 %v2372_v1 }
 0x32b   : > { %2033 = vmatmul.mubr.msk.f32.vlgmr.msra.gmra.mrb[10].mxu0 %vm329_vm2, %v1349_v37 }
 0x32c   : > { %2041 = vmatpush3.xpose.msk.msra.mxu0 %vm329_vm2, %v1522_v40  ;;  %2042 = vmatprep.mubr.msk.f32.mxu0 %vm2371_vm0, %v2372_v1 }
 0x32d   : > { %2067 = vmatprep.subr.bf16.mxu0 %v2370_v0 }
 0x32e   : > { %v2694_v41 = vpop.eup %2175 }
 0x32f   : > { %1978 = vmatmul.mubr.msk.f32.vlgmr.msra.gmra.mrb[2].mxu1 %vm404_vm3, %v2694_v41  ;;  %2043 = vmatmul.mubr.msk.f32.vlgmr.msra.gmra.mrb[12].mxu0 %vm329_vm2, %v1520_v42 }
 0x330   : > { %1981 = vmatpush3.xpose.msk.msra.mxu1 %vm329_vm2, %v2643_v13  ;;  %1982 = vmatprep.mubr.msk.f32.mxu1 %vm2371_vm0, %v2372_v1 }
 0x331   : > { %1985 = vmatprep.subr.mxu1 %v2372_v1  ;;  %2058 = vmatprep.mubr.msk.f32.mxu0 %vm2371_vm0, %v2372_v1 }
 0x333   : > { %1983 = vmatmul.mubr.msk.f32.vlgmr.msra.gmra.mrb[4].mxu1 %vm329_vm2, %v2650_v14 }
 0x334   : > { %1986 = vmatpush3.msra.mxu1 %v581_v43  ;;  %1987 = vmatprep.mubr.msk.f32.mxu1 %vm2371_vm0, %v2372_v1 }
 0x335   : > { %1995 = vmatprep.subr.mxu1 %v2372_v1 }
 0x358   : > { %v744_v58 = vpop.xlane.xlu0 %743 }
 0x359   : > { %v745_v60 = vsub.f32 %v2668_v24, %v744_v58 }
 0x35b   : > { %v746_v61 = vmul.f32 1.442695, %v745_v60 }
 0x35c   : > { %v915_v59 = vpop.xlane.xlu0 %914 }
 0x35d   : > { %v916_v62 = vsub.f32 %v2670_v26, %v915_v59  ;;  %2177 = vpow2.f32 %v746_v61  ;;  %v411_v26 = vsel %vm404_vm3, %v2694_v41, 0.0 }
 0x35f   : > { %v917_v2 = vmul.f32 1.442695, %v916_v62 }
 0x360   : > { %v1086_v63 = vpop.xlane.xlu0 %1085 }
 0x361   : > { %v1087_v3 = vsub.f32 %v2674_v28, %v1086_v63  ;;  %2179 = vpow2.f32 %v917_v2  ;;  %v247_v63 = vld [vmem:[#allocation8] sm:$0xff]  ;;  %v248_v2 = vld [vmem:[#allocation8 + $0x8] sm:$0xff] }
 0x363   : > { %v1088_v4 = vmul.f32 1.442695, %v1087_v3  ;;  %v2068_v3 = vpack.c.bf16 %v248_v2, %v247_v63 }
 0x365   : > { %2181 = vpow2.f32 %v1088_v4  ;;  %v249_v4 = vld [vmem:[#allocation8 + $0x10] sm:$0xff]  ;;  %2069 = vmatpush3.bf16.msra.mxu0 %v2068_v3 }
 0x366   : > { %2070 = vmatprep.subr.bf16.mxu0 %v2370_v0 }
 0x367   : > { %v2178_v5 = vpop.eup %2177 }
 0x368   : > { %v748_v6 = vsel %vm404_vm3, %v2178_v5, 0.0 }
 0x36b   : > { %v2180_v7 = vpop.eup %2179 }
 0x36c   : > { %v919_v8 = vsel %vm404_vm3, %v2180_v7, 0.0 }
 0x3fa   : > { %v1251_v44 = vpop.f32.mrb[8].mxu0 }
 0x3fb   : > { %v2024_v45 = vpop.f32.mrb[9].mxu0  ;;  %v1255_v46 = vsel %vm404_vm3, %v1251_v44, -inf }
 0x3fc   : > { %1256 = vmax.xlane.f32.xlu1 %v1255_v46 }
 0x3fe   : > { %v1422_v47 = vpop.f32.mrb[10].mxu0 }
 0x3ff   : > { %v2034_v48 = vpop.f32.mrb[11].mxu0  ;;  %v1426_v49 = vsel %vm404_vm3, %v1422_v47, -inf }
 0x400   : > { %1427 = vmax.xlane.f32.xlu0 %v1426_v49 }
 0x402   : > { %v2713_v50 = vpop.f32.mrb[2].mxu1  ;;  %v1593_v51 = vpop.f32.mrb[12].mxu0 }
 0x403   : > { %v1979_v52 = vpop.f32.mrb[3].mxu1  ;;  %v2044_v53 = vpop.f32.mrb[13].mxu0  ;;  %v1597_v54 = vsel %vm404_vm3, %v1593_v51, -inf }
 0x404   : > { %1598 = vmax.xlane.f32.xlu1 %v1597_v54 }
 0x406   : > { %v567_v55 = vpop.f32.mrb[4].mxu1 }
 0x407   : > { %v1984_v56 = vpop.f32.mrb[5].mxu1  ;;  %v571_v57 = vsel %vm404_vm3, %v567_v55, -inf }
 0x408   : > { %572 = vmax.xlane.f32.xlu1 %v571_v57 }
 0x416   : > { %1264 = vrot.lane.b32.xlu0 %v2623_v9, %s2391_s30  ;;  %s241_s30 = scalar_lea.vmem [#allocation9], %s1882_s25  ;;  %s2403_s25 = smov [#allocation9]  }
 0x419   : > { %922 = vrot.lane.b32.xlu1 %v2623_v9, %s2392_s5  ;;  %s1785_s5 = sshll.u32 %s241_s30, 4  ;;  %s2773_s5 = int_to_ptr.vmem [resolvable:$true] %s1785_s5 }
 0x41a   : > { %1606 = vrot.lane.b32.xlu0 %v2623_v9, %s2393_s6  ;;  %s2293_s19 = scalar_lea.vmem %s2773_s5, 128 }
 0x41b   : > { %p2294_p11 = scmp.ne.s32.totalorder %s2773_s5, %s2293_s19 }
 0x41d   : > { %1093 = vrot.lane.b32.xlu1 %v2623_v9, %s2394_s26  ;;  %p2295_p1 = pnand %p2294_p11, %p2834_p0 }
 0x41f   : > { %p2296_p3 = pneg %p2295_p1 }
 0x421   : > { %1435 = vrot.lane.b32.xlu1 %v2623_v9, %s2395_s10  ;;  %v2182_v9 = vpop.eup %2181  ;;  %s2771_s10 = scalar_lea.hbm %s2820_s4, %s1914_s27 }
 0x422   : > { %v1090_v10 = vsel %vm404_vm3, %v2182_v9, 0.0 }
 0x439   : > { %749 = vadd.xlane.f32.xlu0 %v748_v6 }
 0x43d   : > { %920 = vadd.xlane.f32.xlu0 %v919_v8 }
 0x441   : > { %1091 = vadd.xlane.f32.xlu0 %v1090_v10 }
 0x489   : > { %v1257_v12 = vpop.xlane.xlu1 %1256 }
 0x48a   : > { %v1258_v17 = vsub.f32 %v1251_v44, %v1257_v12 }
 0x48c   : > { %v1259_v20 = vmul.f32 1.442695, %v1258_v17 }
 0x48d   : > { %v1428_v13 = vpop.xlane.xlu0 %1427 }
 0x48e   : > { %v1429_v14 = vsub.f32 %v1422_v47, %v1428_v13 }
 0x490   : > { %v1430_v15 = vmul.f32 1.442695, %v1429_v14 }
 0x491   : > { %v1599_v16 = vpop.xlane.xlu1 %1598  ;;  %v1265_v35 = vpop.permute.xlu0 %1264 }
 0x492   : > { %2183 = vpow2.f32 %v1430_v15  ;;  %v1600_v21 = vsub.f32 %v1593_v51, %v1599_v16 }
 0x494   : > { %v1601_v24 = vmul.f32 1.442695, %v1600_v21 }
 0x495   : > { %v573_v18 = vpop.xlane.xlu1 %572  ;;  %v1607_v37 = vpop.permute.xlu0 %1606 }
 0x496   : > { %v574_v19 = vsub.f32 %v567_v55, %v573_v18 }
 0x498   : > { %v575_v22 = vmul.f32 1.442695, %v574_v19 }
 0x499   : > { %v923_v30 = vpop.permute.xlu1 %922 }
 0x49a   : > { %2185 = vpow2.f32 %v575_v22 }
 0x49b   : > { %2187 = vpow2.f32 %v1259_v20 }
 0x49c   : > { %v2184_v23 = vpop.eup %2183  ;;  %2189 = vpow2.f32 %v1601_v24 }
 0x49d   : > { %v1432_v25 = vsel %vm404_vm3, %v2184_v23, 0.0  ;;  %v1094_v33 = vpop.permute.xlu1 %1093 }
 0x49e   : > { %1433 = vadd.xlane.f32.xlu0 %v1432_v25 }
 0x4a1   : > { %v1436_v36 = vpop.permute.xlu1 %1435 }
 0x4a2   : > { %412 = vadd.xlane.f32.xlu0 %v411_v26  ;;  %v1911_v26 = vld [vmem:[%s2819_s3] ss:$0 sm:$0xff] }
 0x4a4   : > { %v2186_v27 = vpop.eup %2185 }
 0x4a5   : > { %1988 = vmatmul.mubr.msk.f32.vlgmr.msra.gmra.mrb[6].mxu1 %vm404_vm3, %v2186_v27  ;;  %v577_v28 = vsel %vm404_vm3, %v2186_v27, 0.0  ;;  %v2188_v29 = vpop.eup %2187 }
 0x4a6   : > { %1996 = vmatpush3.msra.mxu1 %v752_v11  ;;  %578 = vadd.xlane.f32.xlu1 %v577_v28  ;;  %v1261_v31 = vsel %vm404_vm3, %v2188_v29, 0.0  ;;  %v2190_v32 = vpop.eup %2189 }
 0x4a7   : > { %1997 = vmatprep.mubr.msk.f32.mxu1 %vm2371_vm0, %v2372_v1  ;;  %2005 = vmatprep.subr.mxu1 %v2372_v1  ;;  %v1603_v34 = vsel %vm404_vm3, %v2190_v32, 0.0 }
 0x4a9   : > { %1998 = vmatmul.mubr.msk.f32.vlgmr.msra.gmra.mrb[8].mxu1 %vm404_vm3, %v2178_v5  ;;  %v250_v5 = vld [vmem:[#allocation8 + $0x18] sm:$0xff] }
 0x4aa   : > { %2006 = vmatpush3.msra.mxu1 %v923_v30  ;;  %1262 = vadd.xlane.f32.xlu1 %v1261_v31  ;;  %v2071_v8 = vpack.c.bf16 %v250_v5, %v249_v4 }
 0x4ab   : > { %2007 = vmatprep.mubr.msk.f32.mxu1 %vm2371_vm0, %v2372_v1  ;;  %2015 = vmatprep.subr.mxu1 %v2372_v1 }
 0x4ac   : > { %2072 = vmatpush3.bf16.msra.mxu0 %v2071_v8 }
 0x4ad   : > { %2008 = vmatmul.mubr.msk.f32.vlgmr.msra.gmra.mrb[10].mxu1 %vm404_vm3, %v2180_v7 }
 0x4ae   : > { %2016 = vmatpush3.msra.mxu1 %v1094_v33  ;;  %1604 = vadd.xlane.f32.xlu1 %v1603_v34 }
 0x4af   : > { %2017 = vmatprep.mubr.msk.f32.mxu1 %vm2371_vm0, %v2372_v1  ;;  %2025 = vmatprep.subr.mxu1 %v2372_v1 }
 0x4b1   : > { %2018 = vmatmul.mubr.msk.f32.vlgmr.msra.gmra.mrb[12].mxu1 %vm404_vm3, %v2182_v9 }
 0x4b2   : > { %2026 = vmatpush3.msra.mxu1 %v1265_v35  ;;  %2027 = vmatprep.mubr.msk.f32.mxu1 %vm2371_vm0, %v2372_v1 }
 0x4b3   : > { %2035 = vmatprep.subr.mxu1 %v2372_v1 }
 0x4b5   : > { %2028 = vmatmul.mubr.msk.f32.vlgmr.msra.gmra.mrb[14].mxu1 %vm404_vm3, %v2188_v29 }
 0x4b6   : > { %2036 = vmatpush3.msra.mxu1 %v1436_v36  ;;  %2037 = vmatprep.mubr.msk.f32.mxu1 %vm2371_vm0, %v2372_v1 }
 0x4b7   : > { %2045 = vmatprep.subr.mxu1 %v2372_v1 }
 0x4b9   : > { %2038 = vmatmul.mubr.msk.f32.vlgmr.msra.gmra.mrb[16].mxu1 %vm404_vm3, %v2184_v23 }
 0x4ba   : > { %2046 = vmatpush3.msra.mxu1 %v1607_v37  ;;  %2047 = vmatprep.mubr.msk.f32.mxu1 %vm2371_vm0, %v2372_v1 }
 0x4bd   : > { %2048 = vmatmul.mubr.msk.f32.vlgmr.msra.gmra.mrb[18].mxu1 %vm404_vm3, %v2190_v32 }
 0x4c6   : > { %v750_v38 = vpop.xlane.xlu0 %749 }
 0x4ca   : > { %v921_v39 = vpop.xlane.xlu0 %920 }
 0x4ce   : > { %v1092_v40 = vpop.xlane.xlu0 %1091 }
 0x52b   : > { %v1434_v41 = vpop.xlane.xlu0 %1433 }
 0x52f   : > { %v413_v42 = vpop.xlane.xlu0 %412 }
 0x530   : > { %2191 = vrcp.f32 %v413_v42 }
 0x533   : > { %v579_v45 = vpop.xlane.xlu1 %578 }
 0x534   : > { %2193 = vrcp.f32 %v579_v45 }
 0x535   : > { %2195 = vrcp.f32 %v750_v38 }
 0x536   : > { %2197 = vrcp.f32 %v921_v39 }
 0x537   : > { %2199 = vrcp.f32 %v1092_v40  ;;  %v1263_v49 = vpop.xlane.xlu1 %1262 }
 0x538   : > { %2201 = vrcp.f32 %v1263_v49 }
 0x539   : > { %2203 = vrcp.f32 %v1434_v41 }
 0x53a   : > { %v2192_v43 = vpop.eup %2191 }
 0x53b   : > { %v491_v44 = vmul.f32 %v2192_v43, %v2713_v50  ;;  %v1605_v58 = vpop.xlane.xlu1 %1604 }
 0x53c   : > { %2205 = vrcp.f32 %v1605_v58 }
 0x53d   : > { %492 = vst.msk [vmem:[#allocation2] sm:$0xff] %vm329_vm2, %v491_v44 }
 0x53e   : > { %v2194_v46 = vpop.eup %2193 }
 0x53f   : > { %v2196_v51 = vpop.eup %2195 }
 0x540   : > { %v2198_v50 = vpop.eup %2197 }
 0x541   : > { %v2200_v59 = vpop.eup %2199 }
 0x542   : > { %v2202_v6 = vpop.eup %2201 }
 0x543   : > { %v2204_v11 = vpop.eup %2203 }
 0x546   : > { %v2206_v15 = vpop.eup %2205 }
 0x578   : > { %v652_v47 = vpop.f32.mrb[6].mxu1 }
 0x579   : > { %v657_v1 = vmul.f32 %v2194_v46, %v652_v47  ;;  %v1989_v48 = vpop.f32.mrb[7].mxu1 }
 0x57b   : > { %659 = vrot.lane.b32.xlu1 %v657_v1, %s2396_s24  ;;  %s1772_s24 = scalar_lea.sflag [#allocation5], %s2598_s29 }
 0x57c   : > { %v823_v52 = vpop.f32.mrb[8].mxu1 }
 0x57d   : > { %v828_v53 = vmul.f32 %v2196_v51, %v823_v52  ;;  %v1999_v54 = vpop.f32.mrb[9].mxu1 }
 0x57f   : > { %830 = vrot.lane.b32.xlu0 %v828_v53, %s2397_s20  ;;  %s2297_s20 = sshll.u32 %s2403_s25, 4  ;;  %s2298_s20 = int_to_ptr.vmem [resolvable:$false] %s2297_s20 }
 0x580   : > { %v994_v55 = vpop.f32.mrb[10].mxu1  ;;  %p2300_p7 = scmp.lt.s32.totalorder %s2773_s5, %s2298_s20 }
 0x581   : > { %v999_v56 = vmul.f32 %v2198_v50, %v994_v55  ;;  %v2009_v57 = vpop.f32.mrb[11].mxu1 }
 0x583   : > { %1001 = vrot.lane.b32.xlu1 %v999_v56, %s2398_s28  ;;  %s2299_s28 = scalar_lea.vmem %s2298_s20, 256 }
 0x584   : > { %v1165_v60 = vpop.f32.mrb[12].mxu1  ;;  %p2301_p9 = scmp.lt.s32.totalorder %s2299_s28, %s2293_s19 }
 0x585   : > { %v1170_v61 = vmul.f32 %v2200_v59, %v1165_v60  ;;  %v2019_v62 = vpop.f32.mrb[13].mxu1 }
 0x586   : > { %p2302_p12 = por %p2301_p9, %p2300_p7 }
 0x587   : > { %1172 = vrot.lane.b32.xlu1 %v1170_v61, %s2399_s11 }
 0x588   : > { %v1336_v7 = vpop.f32.mrb[14].mxu1  ;;  %p2303_p2 = pnand %p2302_p12, %p2296_p3 }
 0x589   : > { %v1341_v9 = vmul.f32 %v2202_v6, %v1336_v7  ;;  %v2029_v10 = vpop.f32.mrb[15].mxu1 }
 0x58b   : > { %1343 = vrot.lane.b32.xlu1 %v1341_v9, %s2400_s12 }
 0x58c   : > { %v1507_v12 = vpop.f32.mrb[16].mxu1 }
 0x58d   : > { %v1512_v13 = vmul.f32 %v2204_v11, %v1507_v12  ;;  %v2039_v14 = vpop.f32.mrb[17].mxu1 }
 0x58f   : > { %1514 = vrot.lane.b32.xlu0 %v1512_v13, %s2401_s7 }
 0x590   : > { %v1678_v16 = vpop.f32.mrb[18].mxu1 }
 0x591   : > { %v1683_v17 = vmul.f32 %v2206_v15, %v1678_v16  ;;  %v2049_v18 = vpop.f32.mrb[19].mxu1 }
 0x593   : > { %1685 = vrot.lane.b32.xlu1 %v1683_v17, %s2402_s8 }
 0x5ed   : > { %v660_v19 = vpop.permute.xlu1 %659 }
 0x5ee   : > { %663 = vst.msk [vmem:[#allocation2] sm:$0xff] %vm662_vm4, %v660_v19 }
 0x5f1   : > { %v831_v0 = vpop.permute.xlu0 %830 }
 0x5f2   : > { %834 = vst.msk [vmem:[#allocation2] sm:$0xff] %vm833_vm5, %v831_v0 }
 0x5f5   : > { %v1002_v20 = vpop.permute.xlu1 %1001 }
 0x5f6   : > { %1005 = vst.msk [vmem:[#allocation2] sm:$0xff] %vm1004_vm6, %v1002_v20 }
 0x5f9   : > { %v1173_v21 = vpop.permute.xlu1 %1172 }
 0x5fa   : > { %1176 = vst.msk [vmem:[#allocation2] sm:$0xff] %vm1175_vm7, %v1173_v21 }
 0x5fd   : > { %v1344_v22 = vpop.permute.xlu1 %1343 }
 0x5fe   : > { %1347 = vst.msk [vmem:[#allocation2] sm:$0xff] %vm1346_vm8, %v1344_v22 }
 0x601   : > { %v1515_v23 = vpop.permute.xlu0 %1514 }
 0x602   : > { %1518 = vst.msk [vmem:[#allocation2] sm:$0xff] %vm1517_vm9, %v1515_v23 }
 0x605   : > { %v1686_v24 = vpop.permute.xlu1 %1685 }
 0x606   : > { %1689 = vst.msk [vmem:[#allocation2] sm:$0xff] %vm1688_vm10, %v1686_v24 }
 0x60d   : > { %v1690_v25 = vld [vmem:[#allocation2] sm:$0xff] }
 0x60e   : > { %2059 = vmatmul.mubr.msk.f32.vlgmr.msra.gmra.mrb[14].mxu0 %vm252_vm1, %v1690_v25 }
 0x6e1   : > { %v1766_v27 = vpop.f32.mrb[14].mxu0 }
 0x6e2   : > { %v1767_v28 = vadd.f32 %v1911_v26, %v1766_v27  ;;  %v2060_v29 = vpop.f32.mrb[15].mxu0 }
 0x6e4   : > { %1770 = vst.msk [vmem:[%s241_s30] sm:$0xff] %vm252_vm1, %v1767_v28 }
 0x6e5   : > { %2306 = shalt.err (!%p2303_p2)
}
 0x6e6   : > { %s2307_s29 = scalar_lea.hbm %s2771_s10, 128  ;;  %s2311_s7 = scalar_lea.hbm %s2820_s4, 256 }
 0x6e7   : > { %p2308_p13 = scmp.ne.s32.totalorder %s2771_s10, %s2307_s29  ;;  %p2312_p4 = scmp.lt.u32.totalorder %s2771_s10, %s2820_s4 }
 0x6e8   : > { %p2313_p5 = scmp.lt.u32.totalorder %s2311_s7, %s2307_s29  ;;  %p2315_p11 = scmp.lt.u32.totalorder %s2307_s29, %s2771_s10 }
 0x6e9   : > { %p2309_p6 = pnand %p2308_p13, %p2834_p0 }
 0x6ea   : > { %p2314_p8 = por %p2313_p5, %p2312_p4 }
 0x6eb   : > { %p2310_p10 = pneg %p2309_p6 }
 0x6ec   : > { %p2316_p1 = por %p2315_p11, %p2314_p8 }
 0x6ee   : > { %p2317_p3 = pnand %p2316_p1, %p2310_p10 }
 0x6f0   : > { %2320 = shalt.err (!%p2317_p3)
}
 0x6f1   : > { %2083 = dma.vmem_to_hbm [thread:$0]  (%p2834_p0), %s2773_s5, 128, %s2771_s10, %s1772_s24  }
 0x6f2 PF: > { %s1797_s23 = sand.u32 1, %s2351_s15   ;;  %p2835_p7 = scmp.ne.s32.totalorder %s2825_s22, 0 }
 0x6f3   : > { %p2836_p9 = scmp.ge.s32.totalorder %s2363_s18, 2  ;;  %s1798_s27 = scalar_lea.sflag [#allocation5], %s1797_s23 }
 0x6f5   : > { %p2097_p12 = pnand %p2836_p9, %p2835_p7 }
 0x6f7   : > { %2346 = dma.done.wait (!%p2097_p12), %s1798_s27, 128  }
 0x6f8   : > { %2348 = vsyncadd (!%p2097_p12), %s1798_s27, 4294967168  ;;  %p18_p2 = scmp.ge.s32.totalorder %s2539_s9, 4   ;;  %s2837_s15 = smov %s2355_s16 }
 0x6f9   : > { %s2838_s16 = smov %s2359_s17  ;;  %s2839_s17 = smov %s2555_s14 }
 0x6fa   : > { %s2840_s18 = smov %s2539_s9  ;;  %20 = sbr.rel (!%p18_p2) target bundleno = 6 (0x6), region = 89 }
 0x701   :  { %1803 = vsyncpa [#allocation4], 1 }
 0x702   :  { %1805 = vsyncpa [#allocation4 + $0x1], 1 }
 0x703   :  { %1806 = vsyncpa [#allocation7], 1 }
 0x704   :  { %1807 = vsyncpa [#allocation5], 1 }
 0x705   :  { %1809 = vsyncpa [#allocation5 + $0x1], 1 }

</bundles_post_ra>
